<compile_context>
chip_gen: v6e
topology: v6e:2x2x1
jax: 0.10.0
libtpu: 0.0.40
codegen_flags: <defaults>
</compile_context>

<pallas_src>
import functools

import jax
import jax.numpy as jnp
import numpy as np
from jax import lax
from jax.experimental import pallas as pl
from jax.experimental.pallas import tpu as pltpu


# ----------------------------------------------------------------------------
# Pallas kernel: whole Encoder forward in one invocation (all-resident VMEM).
# ----------------------------------------------------------------------------
def encoder_kernel(src_ref,      # (B*S, D_in)   batch-major (row = b*S + t)
                   w_in_ref,     # (D_in, E)
                   b_in_ref,     # (1, E)
                   w_ih_ref,     # (E, 4H)   gate cols permuted to [i, f, o, g]
                   w_hh_ref,     # (H, 4H)   gate cols permuted to [i, f, o, g]
                   b_g_ref,      # (1, 4H)   (= b_ih + b_hh, permuted)
                   w_out_ref,    # (H, O)
                   b_out_ref,    # (1, O)
                   y_ref,        # out: (B*S, O)  batch-major
                   h_ref,        # out: (B, H)
                   c_ref,        # out: (B, H)
                   g_scr,        # scratch: (BP*S, 4H) VMEM, batch-major gate buffer
                   h_scr,        # scratch: (BP*S, H)  VMEM, time-major h sequence
                   *, seq_len, batch, batch_pad):
    H = w_hh_ref.shape[0]
    S, B, BP = seq_len, batch, batch_pad
    n_real = B * S
    n_pad_rows = BP * S - n_real

    # ---- Pre-loop: batched projections over all real rows (off the serial path).
    # E_all = src @ W_in + b_in              (B*S, E)
    # G     = E_all @ W_ih + (b_ih + b_hh)   (B*S, 4H), stored batch-major.
    e_all = (jnp.dot(src_ref[...], w_in_ref[...],
                     preferred_element_type=jnp.float32) + b_in_ref[...])
    g_real = (jnp.dot(e_all, w_ih_ref[...],
                      preferred_element_type=jnp.float32) + b_g_ref[...])
    if n_pad_rows:
        # Zero rows for the synthetic (sublane-padding) batch entries -> one
        # dense aligned store; padded rows stay finite and never reach outputs.
        g_scr[...] = jnp.concatenate(
            [g_real, jnp.zeros((n_pad_rows, 4 * H), jnp.float32)], axis=0)
    else:
        g_scr[...] = g_real

    # Loop-invariant recurrent weight held in vregs for the whole recurrence.
    w_hh = w_hh_ref[...]

    h = jnp.zeros((BP, H), dtype=jnp.float32)
    c = jnp.zeros((BP, H), dtype=jnp.float32)

    # ---- Serial recurrence: fully unrolled (S is static & small). ----
    for t in range(S):
        # Rows {b*S + t : b} of the batch-major gate buffer: one sublane-strided
        # read gives a (BP, 4H) = full-vreg tile (BP is a sublane multiple).
        g_t = g_scr[pl.ds(t, BP, stride=S), :]
        gates = g_t + jnp.dot(h, w_hh, preferred_element_type=jnp.float32)

        # Gate layout [i, f, o, g]: one contiguous sigmoid slab + one tanh slab.
        sig = jax.nn.sigmoid(gates[:, :3 * H])
        g_g = jnp.tanh(gates[:, 3 * H:])
        i_g = sig[:, 0 * H:1 * H]
        f_g = sig[:, 1 * H:2 * H]
        o_g = sig[:, 2 * H:3 * H]

        c = f_g * c + i_g * g_g
        h = o_g * jnp.tanh(c)

        # Time-major, sublane-aligned store (BP rows, offset t*BP); off the
        # h -> h dependence chain, so the scheduler can hide it under step t+1.
        h_scr[t * BP:(t + 1) * BP, :] = h

    # Final hidden / cell state: only the real batch rows.
    h_ref[...] = h[:B, :]
    c_ref[...] = c[:B, :]

    # ---- Post-loop: gather the h sequence back to batch-major with B strided
    # reads, then one batched output projection and one dense batch-major store.
    h_bm = jnp.concatenate(
        [h_scr[pl.ds(b, S, stride=BP), :] for b in range(B)], axis=0)  # (B*S, H)
    y_ref[...] = (jnp.dot(h_bm, w_out_ref[...],
                          preferred_element_type=jnp.float32) + b_out_ref[...])


# ----------------------------------------------------------------------------
# One-time parameter packing for the kernel (outside the per-call hot path):
# gate-column permutation [i,f,g,o] -> [i,f,o,g], bias folding, 2-D biases.
# ----------------------------------------------------------------------------
def pack_params(params):
    E = params["w_in"].shape[1]
    H = params["w_hh"].shape[0]
    O = params["w_out"].shape[1]

    def perm(w):  # last axis is 4H in PyTorch order [i, f, g, o] -> [i, f, o, g]
        i, f, g, o = jnp.split(w, 4, axis=-1)
        return jnp.concatenate([i, f, o, g], axis=-1)

    return dict(
        w_in=params["w_in"],
        b_in=params["b_in"].reshape(1, E),
        w_ih=perm(params["w_ih"]),
        w_hh=perm(params["w_hh"]),
        b_g=perm((params["b_ih"] + params["b_hh"]).reshape(1, 4 * H)),
        w_out=params["w_out"],
        b_out=params["b_out"].reshape(1, O),
    )


# ----------------------------------------------------------------------------
# Wrapper: only free reshapes around a single pallas_call.
# ----------------------------------------------------------------------------
@jax.jit
def encoder_forward(src, packed):
    """src: (B, S, D_in) float32.  Returns (y, hidden, cell) matching PyTorch."""
    B, S, D_in = src.shape
    w_in, b_in = packed["w_in"], packed["b_in"]
    w_ih, w_hh, b_g = packed["w_ih"], packed["w_hh"], packed["b_g"]
    w_out, b_out = packed["w_out"], packed["b_out"]
    H = w_hh.shape[0]
    O = w_out.shape[1]

    BP = ((B + 7) // 8) * 8                    # batch padded to a sublane group
    src_flat = src.reshape(B * S, D_in)        # batch-major flatten: free, no copy

    kernel = functools.partial(encoder_kernel, seq_len=S, batch=B, batch_pad=BP)

    y_flat, hidden, cell = pl.pallas_call(
        kernel,
        out_shape=(
            jax.ShapeDtypeStruct((B * S, O), jnp.float32),
            jax.ShapeDtypeStruct((B, H), jnp.float32),
            jax.ShapeDtypeStruct((B, H), jnp.float32),
        ),
        in_specs=[pl.BlockSpec(memory_space=pltpu.MemorySpace.VMEM)] * 8,
        out_specs=(pl.BlockSpec(memory_space=pltpu.MemorySpace.VMEM),) * 3,
        scratch_shapes=[
            pltpu.VMEM((BP * S, 4 * H), jnp.float32),   # batch-major gate buffer
            pltpu.VMEM((BP * S, H), jnp.float32),       # time-major h sequence
        ],
    )(src_flat, w_in, b_in, w_ih, w_hh, b_g, w_out, b_out)

    y = y_flat.reshape(B, S, O)                 # free: rows already batch-major
    return y, hidden[None], cell[None]          # (n_layers=1, B, H)


# ----------------------------------------------------------------------------
# Deterministic parameter construction (synthetic; mirrors the module shapes).
# layer_init(..., 0.001) -> small-scale weights, zero bias.
# ----------------------------------------------------------------------------
def make_params(key, input_dim, embed_dim, hid_dim, output_dim):
    ks = jax.random.split(key, 6)
    scale_lstm = 1.0 / np.sqrt(hid_dim)
    return dict(
        w_in=0.001 * jax.random.normal(ks[0], (input_dim, embed_dim), jnp.float32),
        b_in=jnp.zeros((embed_dim,), jnp.float32),
        w_ih=scale_lstm * jax.random.normal(ks[1], (embed_dim, 4 * hid_dim), jnp.float32),
        w_hh=scale_lstm * jax.random.normal(ks[2], (hid_dim, 4 * hid_dim), jnp.float32),
        b_ih=scale_lstm * jax.random.normal(ks[3], (4 * hid_dim,), jnp.float32),
        b_hh=scale_lstm * jax.random.normal(ks[4], (4 * hid_dim,), jnp.float32),
        w_out=0.001 * jax.random.normal(ks[5], (hid_dim, output_dim), jnp.float32),
        b_out=jnp.zeros((output_dim,), jnp.float32),
    )


# ----------------------------------------------------------------------------
# Pure-JAX reference (same math as torch.nn.LSTM, batch_first, 1 layer).
# ----------------------------------------------------------------------------
def encoder_reference(src, params):
    B, S, _ = src.shape
    H = params["w_hh"].shape[0]
    e = src @ params["w_in"] + params["b_in"]

    def step(carry, x_t):
        h, c = carry
        gates = x_t @ params["w_ih"] + h @ params["w_hh"] + params["b_ih"] + params["b_hh"]
        i = jax.nn.sigmoid(gates[:, 0 * H:1 * H])
        f = jax.nn.sigmoid(gates[:, 1 * H:2 * H])
        g = jnp.tanh(gates[:, 2 * H:3 * H])
        o = jax.nn.sigmoid(gates[:, 3 * H:4 * H])
        c_new = f * c + i * g
        h_new = o * jnp.tanh(c_new)
        return (h_new, c_new), h_new

    init = (jnp.zeros((B, H)), jnp.zeros((B, H)))
    (h_last, c_last), outs = lax.scan(step, init, jnp.transpose(e, (1, 0, 2)))
    outputs = jnp.transpose(outs, (1, 0, 2))
    y = outputs @ params["w_out"] + params["b_out"]
    return y, h_last[None], c_last[None]


if __name__ == "__main__":
    # Small shapes consistent with the module's forward.
    B, S = 2, 8
    input_dim, embed_dim, hid_dim, output_dim = 4, 16, 32, 8

    key = jax.random.PRNGKey(0)
    k_src, k_par = jax.random.split(key)
    src = jax.random.normal(k_src, (B, S, input_dim), jnp.float32)
    params = make_params(k_par, input_dim, embed_dim, hid_dim, output_dim)
    packed = pack_params(params)   # one-time kernel-side weight packing

    y, hidden, cell = encoder_forward(src, packed)
    jax.block_until_ready((y, hidden, cell))

    # Correctness check against the pure-JAX reference (unpermuted params).
    y_ref, h_ref, c_ref = encoder_reference(src, params)
    np.testing.assert_allclose(np.asarray(y), np.asarray(y_ref), rtol=1e-5, atol=1e-5)
    np.testing.assert_allclose(np.asarray(hidden), np.asarray(h_ref), rtol=1e-5, atol=1e-5)
    np.testing.assert_allclose(np.asarray(cell), np.asarray(c_ref), rtol=1e-5, atol=1e-5)

    assert y.shape == (B, S, output_dim)
    assert hidden.shape == (1, B, hid_dim)
    assert cell.shape == (1, B, hid_dim)
    print("KERNEL_OK")
</pallas_src>

<mosaic_0001>
module attributes {stable_mosaic.version = 11 : i64} {
  func.func @encoder_kernel(%arg0: memref<16x4xf32, #tpu.memory_space<vmem>>, %arg1: memref<4x16xf32, #tpu.memory_space<vmem>>, %arg2: memref<1x16xf32, #tpu.memory_space<vmem>>, %arg3: memref<16x128xf32, #tpu.memory_space<vmem>>, %arg4: memref<32x128xf32, #tpu.memory_space<vmem>>, %arg5: memref<1x128xf32, #tpu.memory_space<vmem>>, %arg6: memref<32x8xf32, #tpu.memory_space<vmem>>, %arg7: memref<1x8xf32, #tpu.memory_space<vmem>>, %arg8: memref<16x8xf32, #tpu.memory_space<vmem>>, %arg9: memref<2x32xf32, #tpu.memory_space<vmem>>, %arg10: memref<2x32xf32, #tpu.memory_space<vmem>>, %arg11: memref<64x128xf32, #tpu.memory_space<vmem>>, %arg12: memref<64x32xf32, #tpu.memory_space<vmem>>) attributes {dimension_semantics = [], scalar_prefetch = 0 : i64, scratch_operands = 2 : i64, tpu.core_type = #tpu.core_type<tc>} {
    %c0 = arith.constant 0 : index
    %c0_0 = arith.constant 0 : index
    %0 = vector.load %arg0[%c0, %c0_0] : memref<16x4xf32, #tpu.memory_space<vmem>>, vector<16x4xf32>
    %c0_1 = arith.constant 0 : index
    %c0_2 = arith.constant 0 : index
    %1 = vector.load %arg1[%c0_1, %c0_2] : memref<4x16xf32, #tpu.memory_space<vmem>>, vector<4x16xf32>
    %cst = arith.constant dense<0.000000e+00> : vector<16x16xf32>
    %2 = tpu.matmul %0, %1, %cst {dimension_numbers = #tpu.dot_dimension_numbers<[1], [0], [0], [1], [0, 0, 1, 1], [], []>} : vector<16x4xf32>, vector<4x16xf32>, vector<16x16xf32> -> vector<16x16xf32>
    %c0_3 = arith.constant 0 : index
    %c0_4 = arith.constant 0 : index
    %3 = vector.load %arg2[%c0_3, %c0_4] : memref<1x16xf32, #tpu.memory_space<vmem>>, vector<1x16xf32>
    %4 = vector.broadcast %3 : vector<1x16xf32> to vector<16x16xf32>
    %5 = arith.addf %2, %4 : vector<16x16xf32>
    %c0_5 = arith.constant 0 : index
    %c0_6 = arith.constant 0 : index
    %6 = vector.load %arg3[%c0_5, %c0_6] : memref<16x128xf32, #tpu.memory_space<vmem>>, vector<16x128xf32>
    %cst_7 = arith.constant dense<0.000000e+00> : vector<16x128xf32>
    %7 = tpu.matmul %5, %6, %cst_7 {dimension_numbers = #tpu.dot_dimension_numbers<[1], [0], [0], [1], [0, 0, 1, 1], [], []>} : vector<16x16xf32>, vector<16x128xf32>, vector<16x128xf32> -> vector<16x128xf32>
    %c0_8 = arith.constant 0 : index
    %c0_9 = arith.constant 0 : index
    %8 = vector.load %arg5[%c0_8, %c0_9] : memref<1x128xf32, #tpu.memory_space<vmem>>, vector<1x128xf32>
    %9 = vector.broadcast %8 : vector<1x128xf32> to vector<16x128xf32>
    %10 = arith.addf %7, %9 : vector<16x128xf32>
    %cst_10 = arith.constant 0.000000e+00 : f32
    %11 = vector.broadcast %cst_10 : f32 to vector<48x128xf32>
    %12 = tpu.concatenate %10, %11 in 0 : vector<16x128xf32>, vector<48x128xf32> -> vector<64x128xf32>
    %c0_11 = arith.constant 0 : index
    %c0_12 = arith.constant 0 : index
    %13 = vector.load %arg11[%c0_11, %c0_12] : memref<64x128xf32, #tpu.memory_space<vmem>>, vector<64x128xf32>
    tpu.vector_store %arg11[%c0_11, %c0_12], %12 {strides = array<i32>} : memref<64x128xf32, #tpu.memory_space<vmem>>, vector<64x128xf32>,
    %c0_13 = arith.constant 0 : index
    %c0_14 = arith.constant 0 : index
    %14 = vector.load %arg4[%c0_13, %c0_14] : memref<32x128xf32, #tpu.memory_space<vmem>>, vector<32x128xf32>
    %cst_15 = arith.constant 0.000000e+00 : f32
    %15 = vector.broadcast %cst_15 : f32 to vector<8x32xf32>
    %cst_16 = arith.constant 0.000000e+00 : f32
    %16 = vector.broadcast %cst_16 : f32 to vector<8x32xf32>
    %c0_17 = arith.constant 0 : index
    %c0_18 = arith.constant 0 : index
    %17 = tpu.strided_load %arg11[%c0_17, %c0_18] {strides = array<i32: 8, 1>} : memref<64x128xf32, #tpu.memory_space<vmem>>, vector<8x128xf32>
    %cst_19 = arith.constant dense<0.000000e+00> : vector<8x128xf32>
    %18 = tpu.matmul %15, %14, %cst_19 {dimension_numbers = #tpu.dot_dimension_numbers<[1], [0], [0], [1], [0, 0, 1, 1], [], []>} : vector<8x32xf32>, vector<32x128xf32>, vector<8x128xf32> -> vector<8x128xf32>
    %19 = arith.addf %17, %18 : vector<8x128xf32>
    %20 = vector.extract_strided_slice %19 {offsets = [0, 0], sizes = [8, 96], strides = [1, 1]} : vector<8x128xf32> to vector<8x96xf32>
    %21 = arith.negf %20 : vector<8x96xf32>
    %22 = math.exp %21 : vector<8x96xf32>
    %cst_20 = arith.constant 1.000000e+00 : f32
    %23 = vector.broadcast %cst_20 : f32 to vector<8x96xf32>
    %24 = arith.addf %23, %22 : vector<8x96xf32>
    %25 = arith.divf %23, %24 : vector<8x96xf32>
    %26 = vector.extract_strided_slice %19 {offsets = [0, 96], sizes = [8, 32], strides = [1, 1]} : vector<8x128xf32> to vector<8x32xf32>
    %27 = math.tanh %26 : vector<8x32xf32>
    %28 = vector.extract_strided_slice %25 {offsets = [0, 0], sizes = [8, 32], strides = [1, 1]} : vector<8x96xf32> to vector<8x32xf32>
    %29 = vector.extract_strided_slice %25 {offsets = [0, 32], sizes = [8, 32], strides = [1, 1]} : vector<8x96xf32> to vector<8x32xf32>
    %30 = vector.extract_strided_slice %25 {offsets = [0, 64], sizes = [8, 32], strides = [1, 1]} : vector<8x96xf32> to vector<8x32xf32>
    %31 = arith.mulf %29, %16 : vector<8x32xf32>
    %32 = arith.mulf %28, %27 : vector<8x32xf32>
    %33 = arith.addf %31, %32 : vector<8x32xf32>
    %34 = math.tanh %33 : vector<8x32xf32>
    %35 = arith.mulf %30, %34 : vector<8x32xf32>
    %c0_21 = arith.constant 0 : index
    %c0_22 = arith.constant 0 : index
    %36 = vector.load %arg12[%c0_21, %c0_22] : memref<64x32xf32, #tpu.memory_space<vmem>>, vector<8x32xf32>
    tpu.vector_store %arg12[%c0_21, %c0_22], %35 {strides = array<i32>} : memref<64x32xf32, #tpu.memory_space<vmem>>, vector<8x32xf32>,
    %c1 = arith.constant 1 : index
    %c0_23 = arith.constant 0 : index
    %37 = tpu.strided_load %arg11[%c1, %c0_23] {strides = array<i32: 8, 1>} : memref<64x128xf32, #tpu.memory_space<vmem>>, vector<8x128xf32>
    %cst_24 = arith.constant dense<0.000000e+00> : vector<8x128xf32>
    %38 = tpu.matmul %35, %14, %cst_24 {dimension_numbers = #tpu.dot_dimension_numbers<[1], [0], [0], [1], [0, 0, 1, 1], [], []>} : vector<8x32xf32>, vector<32x128xf32>, vector<8x128xf32> -> vector<8x128xf32>
    %39 = arith.addf %37, %38 : vector<8x128xf32>
    %40 = vector.extract_strided_slice %39 {offsets = [0, 0], sizes = [8, 96], strides = [1, 1]} : vector<8x128xf32> to vector<8x96xf32>
    %41 = arith.negf %40 : vector<8x96xf32>
    %42 = math.exp %41 : vector<8x96xf32>
    %cst_25 = arith.constant 1.000000e+00 : f32
    %43 = vector.broadcast %cst_25 : f32 to vector<8x96xf32>
    %44 = arith.addf %43, %42 : vector<8x96xf32>
    %45 = arith.divf %43, %44 : vector<8x96xf32>
    %46 = vector.extract_strided_slice %39 {offsets = [0, 96], sizes = [8, 32], strides = [1, 1]} : vector<8x128xf32> to vector<8x32xf32>
    %47 = math.tanh %46 : vector<8x32xf32>
    %48 = vector.extract_strided_slice %45 {offsets = [0, 0], sizes = [8, 32], strides = [1, 1]} : vector<8x96xf32> to vector<8x32xf32>
    %49 = vector.extract_strided_slice %45 {offsets = [0, 32], sizes = [8, 32], strides = [1, 1]} : vector<8x96xf32> to vector<8x32xf32>
    %50 = vector.extract_strided_slice %45 {offsets = [0, 64], sizes = [8, 32], strides = [1, 1]} : vector<8x96xf32> to vector<8x32xf32>
    %51 = arith.mulf %49, %33 : vector<8x32xf32>
    %52 = arith.mulf %48, %47 : vector<8x32xf32>
    %53 = arith.addf %51, %52 : vector<8x32xf32>
    %54 = math.tanh %53 : vector<8x32xf32>
    %55 = arith.mulf %50, %54 : vector<8x32xf32>
    %c8 = arith.constant 8 : index
    %c0_26 = arith.constant 0 : index
    %56 = vector.load %arg12[%c8, %c0_26] : memref<64x32xf32, #tpu.memory_space<vmem>>, vector<8x32xf32>
    tpu.vector_store %arg12[%c8, %c0_26], %55 {strides = array<i32>} : memref<64x32xf32, #tpu.memory_space<vmem>>, vector<8x32xf32>,
    %c2 = arith.constant 2 : index
    %c0_27 = arith.constant 0 : index
    %57 = tpu.strided_load %arg11[%c2, %c0_27] {strides = array<i32: 8, 1>} : memref<64x128xf32, #tpu.memory_space<vmem>>, vector<8x128xf32>
    %cst_28 = arith.constant dense<0.000000e+00> : vector<8x128xf32>
    %58 = tpu.matmul %55, %14, %cst_28 {dimension_numbers = #tpu.dot_dimension_numbers<[1], [0], [0], [1], [0, 0, 1, 1], [], []>} : vector<8x32xf32>, vector<32x128xf32>, vector<8x128xf32> -> vector<8x128xf32>
    %59 = arith.addf %57, %58 : vector<8x128xf32>
    %60 = vector.extract_strided_slice %59 {offsets = [0, 0], sizes = [8, 96], strides = [1, 1]} : vector<8x128xf32> to vector<8x96xf32>
    %61 = arith.negf %60 : vector<8x96xf32>
    %62 = math.exp %61 : vector<8x96xf32>
    %cst_29 = arith.constant 1.000000e+00 : f32
    %63 = vector.broadcast %cst_29 : f32 to vector<8x96xf32>
    %64 = arith.addf %63, %62 : vector<8x96xf32>
    %65 = arith.divf %63, %64 : vector<8x96xf32>
    %66 = vector.extract_strided_slice %59 {offsets = [0, 96], sizes = [8, 32], strides = [1, 1]} : vector<8x128xf32> to vector<8x32xf32>
    %67 = math.tanh %66 : vector<8x32xf32>
    %68 = vector.extract_strided_slice %65 {offsets = [0, 0], sizes = [8, 32], strides = [1, 1]} : vector<8x96xf32> to vector<8x32xf32>
    %69 = vector.extract_strided_slice %65 {offsets = [0, 32], sizes = [8, 32], strides = [1, 1]} : vector<8x96xf32> to vector<8x32xf32>
    %70 = vector.extract_strided_slice %65 {offsets = [0, 64], sizes = [8, 32], strides = [1, 1]} : vector<8x96xf32> to vector<8x32xf32>
    %71 = arith.mulf %69, %53 : vector<8x32xf32>
    %72 = arith.mulf %68, %67 : vector<8x32xf32>
    %73 = arith.addf %71, %72 : vector<8x32xf32>
    %74 = math.tanh %73 : vector<8x32xf32>
    %75 = arith.mulf %70, %74 : vector<8x32xf32>
    %c16 = arith.constant 16 : index
    %c0_30 = arith.constant 0 : index
    %76 = vector.load %arg12[%c16, %c0_30] : memref<64x32xf32, #tpu.memory_space<vmem>>, vector<8x32xf32>
    tpu.vector_store %arg12[%c16, %c0_30], %75 {strides = array<i32>} : memref<64x32xf32, #tpu.memory_space<vmem>>, vector<8x32xf32>,
    %c3 = arith.constant 3 : index
    %c0_31 = arith.constant 0 : index
    %77 = tpu.strided_load %arg11[%c3, %c0_31] {strides = array<i32: 8, 1>} : memref<64x128xf32, #tpu.memory_space<vmem>>, vector<8x128xf32>
    %cst_32 = arith.constant dense<0.000000e+00> : vector<8x128xf32>
    %78 = tpu.matmul %75, %14, %cst_32 {dimension_numbers = #tpu.dot_dimension_numbers<[1], [0], [0], [1], [0, 0, 1, 1], [], []>} : vector<8x32xf32>, vector<32x128xf32>, vector<8x128xf32> -> vector<8x128xf32>
    %79 = arith.addf %77, %78 : vector<8x128xf32>
    %80 = vector.extract_strided_slice %79 {offsets = [0, 0], sizes = [8, 96], strides = [1, 1]} : vector<8x128xf32> to vector<8x96xf32>
    %81 = arith.negf %80 : vector<8x96xf32>
    %82 = math.exp %81 : vector<8x96xf32>
    %cst_33 = arith.constant 1.000000e+00 : f32
    %83 = vector.broadcast %cst_33 : f32 to vector<8x96xf32>
    %84 = arith.addf %83, %82 : vector<8x96xf32>
    %85 = arith.divf %83, %84 : vector<8x96xf32>
    %86 = vector.extract_strided_slice %79 {offsets = [0, 96], sizes = [8, 32], strides = [1, 1]} : vector<8x128xf32> to vector<8x32xf32>
    %87 = math.tanh %86 : vector<8x32xf32>
    %88 = vector.extract_strided_slice %85 {offsets = [0, 0], sizes = [8, 32], strides = [1, 1]} : vector<8x96xf32> to vector<8x32xf32>
    %89 = vector.extract_strided_slice %85 {offsets = [0, 32], sizes = [8, 32], strides = [1, 1]} : vector<8x96xf32> to vector<8x32xf32>
    %90 = vector.extract_strided_slice %85 {offsets = [0, 64], sizes = [8, 32], strides = [1, 1]} : vector<8x96xf32> to vector<8x32xf32>
    %91 = arith.mulf %89, %73 : vector<8x32xf32>
    %92 = arith.mulf %88, %87 : vector<8x32xf32>
    %93 = arith.addf %91, %92 : vector<8x32xf32>
    %94 = math.tanh %93 : vector<8x32xf32>
    %95 = arith.mulf %90, %94 : vector<8x32xf32>
    %c24 = arith.constant 24 : index
    %c0_34 = arith.constant 0 : index
    %96 = vector.load %arg12[%c24, %c0_34] : memref<64x32xf32, #tpu.memory_space<vmem>>, vector<8x32xf32>
    tpu.vector_store %arg12[%c24, %c0_34], %95 {strides = array<i32>} : memref<64x32xf32, #tpu.memory_space<vmem>>, vector<8x32xf32>,
    %c4 = arith.constant 4 : index
    %c0_35 = arith.constant 0 : index
    %97 = tpu.strided_load %arg11[%c4, %c0_35] {strides = array<i32: 8, 1>} : memref<64x128xf32, #tpu.memory_space<vmem>>, vector<8x128xf32>
    %cst_36 = arith.constant dense<0.000000e+00> : vector<8x128xf32>
    %98 = tpu.matmul %95, %14, %cst_36 {dimension_numbers = #tpu.dot_dimension_numbers<[1], [0], [0], [1], [0, 0, 1, 1], [], []>} : vector<8x32xf32>, vector<32x128xf32>, vector<8x128xf32> -> vector<8x128xf32>
    %99 = arith.addf %97, %98 : vector<8x128xf32>
    %100 = vector.extract_strided_slice %99 {offsets = [0, 0], sizes = [8, 96], strides = [1, 1]} : vector<8x128xf32> to vector<8x96xf32>
    %101 = arith.negf %100 : vector<8x96xf32>
    %102 = math.exp %101 : vector<8x96xf32>
    %cst_37 = arith.constant 1.000000e+00 : f32
    %103 = vector.broadcast %cst_37 : f32 to vector<8x96xf32>
    %104 = arith.addf %103, %102 : vector<8x96xf32>
    %105 = arith.divf %103, %104 : vector<8x96xf32>
    %106 = vector.extract_strided_slice %99 {offsets = [0, 96], sizes = [8, 32], strides = [1, 1]} : vector<8x128xf32> to vector<8x32xf32>
    %107 = math.tanh %106 : vector<8x32xf32>
    %108 = vector.extract_strided_slice %105 {offsets = [0, 0], sizes = [8, 32], strides = [1, 1]} : vector<8x96xf32> to vector<8x32xf32>
    %109 = vector.extract_strided_slice %105 {offsets = [0, 32], sizes = [8, 32], strides = [1, 1]} : vector<8x96xf32> to vector<8x32xf32>
    %110 = vector.extract_strided_slice %105 {offsets = [0, 64], sizes = [8, 32], strides = [1, 1]} : vector<8x96xf32> to vector<8x32xf32>
    %111 = arith.mulf %109, %93 : vector<8x32xf32>
    %112 = arith.mulf %108, %107 : vector<8x32xf32>
    %113 = arith.addf %111, %112 : vector<8x32xf32>
    %114 = math.tanh %113 : vector<8x32xf32>
    %115 = arith.mulf %110, %114 : vector<8x32xf32>
    %c32 = arith.constant 32 : index
    %c0_38 = arith.constant 0 : index
    %116 = vector.load %arg12[%c32, %c0_38] : memref<64x32xf32, #tpu.memory_space<vmem>>, vector<8x32xf32>
    tpu.vector_store %arg12[%c32, %c0_38], %115 {strides = array<i32>} : memref<64x32xf32, #tpu.memory_space<vmem>>, vector<8x32xf32>,
    %c5 = arith.constant 5 : index
    %c0_39 = arith.constant 0 : index
    %117 = tpu.strided_load %arg11[%c5, %c0_39] {strides = array<i32: 8, 1>} : memref<64x128xf32, #tpu.memory_space<vmem>>, vector<8x128xf32>
    %cst_40 = arith.constant dense<0.000000e+00> : vector<8x128xf32>
    %118 = tpu.matmul %115, %14, %cst_40 {dimension_numbers = #tpu.dot_dimension_numbers<[1], [0], [0], [1], [0, 0, 1, 1], [], []>} : vector<8x32xf32>, vector<32x128xf32>, vector<8x128xf32> -> vector<8x128xf32>
    %119 = arith.addf %117, %118 : vector<8x128xf32>
    %120 = vector.extract_strided_slice %119 {offsets = [0, 0], sizes = [8, 96], strides = [1, 1]} : vector<8x128xf32> to vector<8x96xf32>
    %121 = arith.negf %120 : vector<8x96xf32>
    %122 = math.exp %121 : vector<8x96xf32>
    %cst_41 = arith.constant 1.000000e+00 : f32
    %123 = vector.broadcast %cst_41 : f32 to vector<8x96xf32>
    %124 = arith.addf %123, %122 : vector<8x96xf32>
    %125 = arith.divf %123, %124 : vector<8x96xf32>
    %126 = vector.extract_strided_slice %119 {offsets = [0, 96], sizes = [8, 32], strides = [1, 1]} : vector<8x128xf32> to vector<8x32xf32>
    %127 = math.tanh %126 : vector<8x32xf32>
    %128 = vector.extract_strided_slice %125 {offsets = [0, 0], sizes = [8, 32], strides = [1, 1]} : vector<8x96xf32> to vector<8x32xf32>
    %129 = vector.extract_strided_slice %125 {offsets = [0, 32], sizes = [8, 32], strides = [1, 1]} : vector<8x96xf32> to vector<8x32xf32>
    %130 = vector.extract_strided_slice %125 {offsets = [0, 64], sizes = [8, 32], strides = [1, 1]} : vector<8x96xf32> to vector<8x32xf32>
    %131 = arith.mulf %129, %113 : vector<8x32xf32>
    %132 = arith.mulf %128, %127 : vector<8x32xf32>
    %133 = arith.addf %131, %132 : vector<8x32xf32>
    %134 = math.tanh %133 : vector<8x32xf32>
    %135 = arith.mulf %130, %134 : vector<8x32xf32>
    %c40 = arith.constant 40 : index
    %c0_42 = arith.constant 0 : index
    %136 = vector.load %arg12[%c40, %c0_42] : memref<64x32xf32, #tpu.memory_space<vmem>>, vector<8x32xf32>
    tpu.vector_store %arg12[%c40, %c0_42], %135 {strides = array<i32>} : memref<64x32xf32, #tpu.memory_space<vmem>>, vector<8x32xf32>,
    %c6 = arith.constant 6 : index
    %c0_43 = arith.constant 0 : index
    %137 = tpu.strided_load %arg11[%c6, %c0_43] {strides = array<i32: 8, 1>} : memref<64x128xf32, #tpu.memory_space<vmem>>, vector<8x128xf32>
    %cst_44 = arith.constant dense<0.000000e+00> : vector<8x128xf32>
    %138 = tpu.matmul %135, %14, %cst_44 {dimension_numbers = #tpu.dot_dimension_numbers<[1], [0], [0], [1], [0, 0, 1, 1], [], []>} : vector<8x32xf32>, vector<32x128xf32>, vector<8x128xf32> -> vector<8x128xf32>
    %139 = arith.addf %137, %138 : vector<8x128xf32>
    %140 = vector.extract_strided_slice %139 {offsets = [0, 0], sizes = [8, 96], strides = [1, 1]} : vector<8x128xf32> to vector<8x96xf32>
    %141 = arith.negf %140 : vector<8x96xf32>
    %142 = math.exp %141 : vector<8x96xf32>
    %cst_45 = arith.constant 1.000000e+00 : f32
    %143 = vector.broadcast %cst_45 : f32 to vector<8x96xf32>
    %144 = arith.addf %143, %142 : vector<8x96xf32>
    %145 = arith.divf %143, %144 : vector<8x96xf32>
    %146 = vector.extract_strided_slice %139 {offsets = [0, 96], sizes = [8, 32], strides = [1, 1]} : vector<8x128xf32> to vector<8x32xf32>
    %147 = math.tanh %146 : vector<8x32xf32>
    %148 = vector.extract_strided_slice %145 {offsets = [0, 0], sizes = [8, 32], strides = [1, 1]} : vector<8x96xf32> to vector<8x32xf32>
    %149 = vector.extract_strided_slice %145 {offsets = [0, 32], sizes = [8, 32], strides = [1, 1]} : vector<8x96xf32> to vector<8x32xf32>
    %150 = vector.extract_strided_slice %145 {offsets = [0, 64], sizes = [8, 32], strides = [1, 1]} : vector<8x96xf32> to vector<8x32xf32>
    %151 = arith.mulf %149, %133 : vector<8x32xf32>
    %152 = arith.mulf %148, %147 : vector<8x32xf32>
    %153 = arith.addf %151, %152 : vector<8x32xf32>
    %154 = math.tanh %153 : vector<8x32xf32>
    %155 = arith.mulf %150, %154 : vector<8x32xf32>
    %c48 = arith.constant 48 : index
    %c0_46 = arith.constant 0 : index
    %156 = vector.load %arg12[%c48, %c0_46] : memref<64x32xf32, #tpu.memory_space<vmem>>, vector<8x32xf32>
    tpu.vector_store %arg12[%c48, %c0_46], %155 {strides = array<i32>} : memref<64x32xf32, #tpu.memory_space<vmem>>, vector<8x32xf32>,
    %c7 = arith.constant 7 : index
    %c0_47 = arith.constant 0 : index
    %157 = tpu.strided_load %arg11[%c7, %c0_47] {strides = array<i32: 8, 1>} : memref<64x128xf32, #tpu.memory_space<vmem>>, vector<8x128xf32>
    %cst_48 = arith.constant dense<0.000000e+00> : vector<8x128xf32>
    %158 = tpu.matmul %155, %14, %cst_48 {dimension_numbers = #tpu.dot_dimension_numbers<[1], [0], [0], [1], [0, 0, 1, 1], [], []>} : vector<8x32xf32>, vector<32x128xf32>, vector<8x128xf32> -> vector<8x128xf32>
    %159 = arith.addf %157, %158 : vector<8x128xf32>
    %160 = vector.extract_strided_slice %159 {offsets = [0, 0], sizes = [8, 96], strides = [1, 1]} : vector<8x128xf32> to vector<8x96xf32>
    %161 = arith.negf %160 : vector<8x96xf32>
    %162 = math.exp %161 : vector<8x96xf32>
    %cst_49 = arith.constant 1.000000e+00 : f32
    %163 = vector.broadcast %cst_49 : f32 to vector<8x96xf32>
    %164 = arith.addf %163, %162 : vector<8x96xf32>
    %165 = arith.divf %163, %164 : vector<8x96xf32>
    %166 = vector.extract_strided_slice %159 {offsets = [0, 96], sizes = [8, 32], strides = [1, 1]} : vector<8x128xf32> to vector<8x32xf32>
    %167 = math.tanh %166 : vector<8x32xf32>
    %168 = vector.extract_strided_slice %165 {offsets = [0, 0], sizes = [8, 32], strides = [1, 1]} : vector<8x96xf32> to vector<8x32xf32>
    %169 = vector.extract_strided_slice %165 {offsets = [0, 32], sizes = [8, 32], strides = [1, 1]} : vector<8x96xf32> to vector<8x32xf32>
    %170 = vector.extract_strided_slice %165 {offsets = [0, 64], sizes = [8, 32], strides = [1, 1]} : vector<8x96xf32> to vector<8x32xf32>
    %171 = arith.mulf %169, %153 : vector<8x32xf32>
    %172 = arith.mulf %168, %167 : vector<8x32xf32>
    %173 = arith.addf %171, %172 : vector<8x32xf32>
    %174 = math.tanh %173 : vector<8x32xf32>
    %175 = arith.mulf %170, %174 : vector<8x32xf32>
    %c56 = arith.constant 56 : index
    %c0_50 = arith.constant 0 : index
    %176 = vector.load %arg12[%c56, %c0_50] : memref<64x32xf32, #tpu.memory_space<vmem>>, vector<8x32xf32>
    tpu.vector_store %arg12[%c56, %c0_50], %175 {strides = array<i32>} : memref<64x32xf32, #tpu.memory_space<vmem>>, vector<8x32xf32>,
    %177 = vector.extract_strided_slice %175 {offsets = [0, 0], sizes = [2, 32], strides = [1, 1]} : vector<8x32xf32> to vector<2x32xf32>
    %c0_51 = arith.constant 0 : index
    %c0_52 = arith.constant 0 : index
    %178 = vector.load %arg9[%c0_51, %c0_52] : memref<2x32xf32, #tpu.memory_space<vmem>>, vector<2x32xf32>
    tpu.vector_store %arg9[%c0_51, %c0_52], %177 {strides = array<i32>} : memref<2x32xf32, #tpu.memory_space<vmem>>, vector<2x32xf32>,
    %179 = vector.extract_strided_slice %173 {offsets = [0, 0], sizes = [2, 32], strides = [1, 1]} : vector<8x32xf32> to vector<2x32xf32>
    %c0_53 = arith.constant 0 : index
    %c0_54 = arith.constant 0 : index
    %180 = vector.load %arg10[%c0_53, %c0_54] : memref<2x32xf32, #tpu.memory_space<vmem>>, vector<2x32xf32>
    tpu.vector_store %arg10[%c0_53, %c0_54], %179 {strides = array<i32>} : memref<2x32xf32, #tpu.memory_space<vmem>>, vector<2x32xf32>,
    %c0_55 = arith.constant 0 : index
    %c0_56 = arith.constant 0 : index
    %181 = tpu.strided_load %arg12[%c0_55, %c0_56] {strides = array<i32: 8, 1>} : memref<64x32xf32, #tpu.memory_space<vmem>>, vector<8x32xf32>
    %c1_57 = arith.constant 1 : index
    %c0_58 = arith.constant 0 : index
    %182 = tpu.strided_load %arg12[%c1_57, %c0_58] {strides = array<i32: 8, 1>} : memref<64x32xf32, #tpu.memory_space<vmem>>, vector<8x32xf32>
    %183 = tpu.concatenate %181, %182 in 0 : vector<8x32xf32>, vector<8x32xf32> -> vector<16x32xf32>
    %c0_59 = arith.constant 0 : index
    %c0_60 = arith.constant 0 : index
    %184 = vector.load %arg6[%c0_59, %c0_60] : memref<32x8xf32, #tpu.memory_space<vmem>>, vector<32x8xf32>
    %cst_61 = arith.constant dense<0.000000e+00> : vector<16x8xf32>
    %185 = tpu.matmul %183, %184, %cst_61 {dimension_numbers = #tpu.dot_dimension_numbers<[1], [0], [0], [1], [0, 0, 1, 1], [], []>} : vector<16x32xf32>, vector<32x8xf32>, vector<16x8xf32> -> vector<16x8xf32>
    %c0_62 = arith.constant 0 : index
    %c0_63 = arith.constant 0 : index
    %186 = vector.load %arg7[%c0_62, %c0_63] : memref<1x8xf32, #tpu.memory_space<vmem>>, vector<1x8xf32>
    %187 = vector.broadcast %186 : vector<1x8xf32> to vector<16x8xf32>
    %188 = arith.addf %185, %187 : vector<16x8xf32>
    %c0_64 = arith.constant 0 : index
    %c0_65 = arith.constant 0 : index
    %189 = vector.load %arg8[%c0_64, %c0_65] : memref<16x8xf32, #tpu.memory_space<vmem>>, vector<16x8xf32>
    tpu.vector_store %arg8[%c0_64, %c0_65], %188 {strides = array<i32>} : memref<16x8xf32, #tpu.memory_space<vmem>>, vector<16x8xf32>,
    return
  }
}

</mosaic_0001>

<bundles_post_ra>
// kernel: encoder_forward.1
= control target key start
LH: loop header
LB: loop body
LE: loop exit
PB: predicated region body
PF: predicated region fallthrough
CT: control target
= control target key end

     0   :  { %16 = vsyncpa [#allocation5], 0  ;;  %vm51_vm0 = vcmask 1043456   ;;  %vm44_vm1 = vcmask 31744   ;;  %s1827_s0 = inlined_call_operand.vmem [shape: f32[16,4], index: 0, kind: input, shape index: {}]   ;;  %s1828_s1 = inlined_call_operand.vmem [shape: f32[4,16], index: 1, kind: input, shape index: {}]   ;;  %s1829_s2 = inlined_call_operand.vmem [shape: f32[1,16], index: 2, kind: input, shape index: {}]   ;;  %s1830_s3 = inlined_call_operand.vmem [shape: f32[16,128], index: 3, kind: input, shape index: {}]   ;;  %s1831_s4 = inlined_call_operand.vmem [shape: f32[32,128], index: 4, kind: input, shape index: {}]   ;;  %s1832_s5 = inlined_call_operand.vmem [shape: f32[1,128], index: 5, kind: input, shape index: {}]   ;;  %s1833_s6 = inlined_call_operand.vmem [shape: f32[32,8], index: 6, kind: input, shape index: {}]   ;;  %s1834_s7 = inlined_call_operand.vmem [shape: f32[1,8], index: 7, kind: input, shape index: {}]   ;;  %s1835_s8 = inlined_call_operand.hbm [shape: f32[16,8], index: 8, kind: output, shape index: {0}]   ;;  %s1836_s9 = inlined_call_operand.hbm [shape: f32[2,32], index: 9, kind: output, shape index: {1}]   ;;  %s1837_s10 = inlined_call_operand.hbm [shape: f32[2,32], index: 10, kind: output, shape index: {2}]  }
   0x1   :  { %v36_v0 = vld [vmem:[%s1828_s1] sm:$0xf]  ;;  %v35_v2 = vld [vmem:[%s1827_s0 + $0x8] sm:$0xff] }
   0x2   :  { %v34_v1 = vld [vmem:[%s1827_s0] sm:$0xff]  ;;  %1312 = vmatprep.subr.msk.mxu1 %vm51_vm0, %v36_v0 }
   0x3   :  { %1314 = vmatprep.mubr.msk.f32.mxu1 %vm44_vm1, %v34_v1 }
   0x4   :  { %17 = vsyncpa [#allocation7], 0  ;;  %1313 = vmatpush3.msk.msra.mxu1 %vm51_vm0, %v36_v0  ;;  %v131_v3 = vld [vmem:[%s1830_s3 + $0x8] sm:$0xff]  ;;  %v130_v4 = vld [vmem:[%s1830_s3] sm:$0xff]  ;;  %v1561_v6 = vmov 0.0   ;;  %vm1562_vm2 = vmmov 0  }
   0x5   :  { %1315 = vmatmul.mubr.msk.f32.vlgmr.msra.gmra.mxu1 %vm44_vm1, %v35_v2  ;;  %1317 = vmatprep.subr.mxu1 %v131_v3  ;;  %v1644_v5 = vld [vmem:[%s1831_s4 + $0x18] sm:$0xff]  ;;  %223 = vst [vmem:[#allocation2 + $0x10] sm:$0xff] %v1561_v6  ;;  %224 = vst [vmem:[#allocation2 + $0x18] sm:$0xff] %v1561_v6  ;;  %v1656_v7 = vld [vmem:[%s1831_s4 + $0x10] sm:$0xff]  ;;  %vm139_vm3 = vcmask 130048   ;;  %s1563_s30 = smov 32  }
   0x6   :  { %1318 = vmatpush3.msra.mxu1 %v131_v3  ;;  %1324 = vmatprep.subr.mxu0 %v1561_v6  ;;  %225 = vst [vmem:[#allocation2 + $0x20] sm:$0xff] %v1561_v6  ;;  %226 = vst [vmem:[#allocation2 + $0x28] sm:$0xff] %v1561_v6  ;;  %v1666_v8 = vld [vmem:[%s1831_s4 + $0x8] sm:$0xff]  ;;  %v1673_v9 = vld [vmem:[%s1831_s4] sm:$0xff]  ;;  %vm236_vm4 = vcmask 261120   ;;  %s1565_s11 = smov 96  }
   0x7   :  { %1319 = vmatprep.subr.mxu1 %v130_v4  ;;  %227 = vst [vmem:[#allocation2 + $0x30] sm:$0xff] %v1561_v6  ;;  %228 = vst [vmem:[#allocation2 + $0x38] sm:$0xff] %v1561_v6  ;;  %1332 = vmatprep.mubr.msk.f32.mxu0 %vm1562_vm2, %v1561_v6  ;;  %v1234_v11 = vld [vmem:[%s1829_s2] ss:$0 sm:$0xff]  ;;  %vm1082_vm5 = vcmask 254976  }
   0x8   :  { %1320 = vmatpush3.msra.mxu1 %v130_v4  ;;  %1325 = vmatpush3.msra.mxu0 %v1644_v5  ;;  %v1238_v17 = vld [vmem:[%s1832_s5] ss:$0 sm:$0xff]  ;;  %s1564_s5 = smov 64  }
   0x9   :  { %1335 = vmatprep.subr.mxu1 %v1561_v6  ;;  %1326 = vmatprep.subr.mxu0 %v1561_v6 }
   0xa   :  { %1327 = vmatpush3.msra.mxu0 %v1656_v7 }
   0xb   :  { %1328 = vmatprep.subr.mxu0 %v1561_v6 }
   0xc   :  { %1329 = vmatpush3.msra.mxu0 %v1666_v8 }
   0xd   :  { %1330 = vmatprep.subr.mxu0 %v1561_v6 }
   0xe   :  { %1331 = vmatpush3.msra.mxu0 %v1673_v9  ;;  %v234_v22 = vld [vmem:[#allocation2] ss:$8 sm:$0xf0]  ;;  %v342_v41 = vld [vmem:[#allocation2 + $0x1] ss:$8 sm:$0xf0] }
   0xf   :  { %1333 = vmatmul.mubr.f32.vlgmr.msra.gmra.mxu0 %v1561_v6  ;;  %1346 = vmatprep.subr.mxu0 %v1561_v6  ;;  %v448_v61 = vld [vmem:[#allocation2 + $0x2] ss:$8 sm:$0xf0] }
  0x10   :  { %1347 = vmatpush3.msra.mxu0 %v1644_v5  ;;  %1354 = vmatprep.mubr.msk.f32.mxu0 %vm1562_vm2, %v1561_v6 }
  0x11   :  { %1348 = vmatprep.subr.mxu0 %v1561_v6 }
  0x12   :  { %1349 = vmatpush3.msra.mxu0 %v1656_v7 }
  0x13   :  { %1350 = vmatprep.subr.mxu0 %v1561_v6 }
  0x14   :  { %1351 = vmatpush3.msra.mxu0 %v1666_v8 }
  0x15   :  { %1352 = vmatprep.subr.mxu0 %v1561_v6 }
  0x16   :  { %1353 = vmatpush3.msra.mxu0 %v1673_v9 }
  0x17   :  { %1368 = vmatprep.subr.mxu0 %v1561_v6 }
  0xc5   :  { %v1316_v10 = vpop.f32.mrf.mxu1 }
  0xc6   :  { %v127_v14 = vadd.f32 %v1316_v10, %v1234_v11 }
  0xc7   :  { %v121_v12 = vpop.f32.mrf.mxu1 }
  0xc8   :  { %v122_v13 = vadd.f32 %v1234_v11, %v121_v12 }
  0xca   :  { %1321 = vmatprep.mubr.msk.f32.mxu1 %vm139_vm3, %v122_v13 }
  0xcb   :  { %1322 = vmatmul.mubr.msk.f32.vlgmr.msra.gmra.mxu1 %vm139_vm3, %v127_v14 }
  0xcc   :  { %1336 = vmatpush3.msra.mxu1 %v1644_v5  ;;  %1343 = vmatprep.mubr.msk.f32.mxu1 %vm1562_vm2, %v1561_v6 }
  0xcd   :  { %1337 = vmatprep.subr.mxu1 %v1561_v6 }
  0xce   :  { %1338 = vmatpush3.msra.mxu1 %v1656_v7 }
  0xcf   :  { %1339 = vmatprep.subr.mxu1 %v1561_v6  ;;  %v306_v15 = vpop.f32.mrf.mxu0 }
  0xd0   :  { %1340 = vmatpush3.msra.mxu1 %v1666_v8 }
  0xd1   :  { %1341 = vmatprep.subr.mxu1 %v1561_v6  ;;  %v1334_v16 = vpop.f32.mrf.mxu0 }
  0xd2   :  { %1342 = vmatpush3.msra.mxu1 %v1673_v9 }
  0xd3   :  { %1357 = vmatprep.subr.mxu1 %v1561_v6 }
 0x18b   :  { %v1323_v18 = vpop.f32.mrf.mxu1 }
 0x18c   :  { %v218_v19 = vadd.f32 %v1323_v18, %v1238_v17 }
 0x18d   :  { %v212_v20 = vpop.f32.mrf.mxu1 }
 0x18e   :  { %222 = vst [vmem:[#allocation2 + $0x8] sm:$0xff] %v218_v19  ;;  %v213_v21 = vadd.f32 %v1238_v17, %v212_v20 }
 0x190   :  { %221 = vst [vmem:[#allocation2] sm:$0xff] %v213_v21 }
 0x197   :  { %v233_v23 = vld [vmem:[#allocation2] ss:$8 sm:$0xf]  ;;  %v341_v40 = vld [vmem:[#allocation2 + $0x1] ss:$8 sm:$0xf] }
 0x198   :  { %v235_v24 = vor.u32 %v234_v22, %v233_v23  ;;  %v343_v42 = vor.u32 %v342_v41, %v341_v40  ;;  %v447_v60 = vld [vmem:[#allocation2 + $0x2] ss:$8 sm:$0xf]  ;;  %v553_v21 = vld [vmem:[#allocation2 + $0x3] ss:$8 sm:$0xf] }
 0x199   :  { %v449_v62 = vor.u32 %v448_v61, %v447_v60  ;;  %v554_v22 = vld [vmem:[#allocation2 + $0x3] ss:$8 sm:$0xf0]  ;;  %v659_v41 = vld [vmem:[#allocation2 + $0x4] ss:$8 sm:$0xf] }
 0x19a   :  { %v310_v25 = vadd.f32 %v306_v15, %v235_v24  ;;  %v555_v23 = vor.u32 %v554_v22, %v553_v21  ;;  %v765_v61 = vld [vmem:[#allocation2 + $0x5] ss:$8 sm:$0xf] }
 0x19c   :  { %1433 = vtanh.f32 %v310_v25  ;;  %v1241_v27 = vmul.f32 -1.442695, %v310_v25 }
 0x19e   :  { %1435 = vpow2.f32 %v1241_v27 }
 0x1a9   :  { %v1434_v26 = vpop.eup %1433 }
 0x1aa   :  { %320 = vrot.lane.b32.xlu0 %v1434_v26, %s1563_s30 }
 0x1ab   :  { %v1436_v28 = vpop.eup %1435 }
 0x1ac   :  { %v314_v29 = vadd.f32 1.0, %v1436_v28 }
 0x1ae   :  { %1437 = vrcp.f32 %v314_v29 }
 0x1bb   :  { %v1438_v30 = vpop.eup %1437 }
 0x1bc   :  { %v318_v33 = vmul.f32 0.0, %v1438_v30 }
 0x21c   :  { %v321_v31 = vpop.permute.xlu0 %320 }
 0x21d   :  { %v323_v32 = vmul.f32 %v1438_v30, %v321_v31 }
 0x21f   :  { %325 = vrot.lane.b32.xlu0 %v323_v32, %s1563_s30 }
 0x291   :  { %v326_v34 = vpop.permute.xlu0 %325 }
 0x292   :  { %v328_v35 = vadd.f32 %v326_v34, %v318_v33 }
 0x294   :  { %1439 = vtanh.f32 %v328_v35 }
 0x2a1   :  { %v1440_v36 = vpop.eup %1439 }
 0x2a2   :  { %331 = vrot.lane.b32.xlu1 %v1440_v36, %s1563_s30 }
 0x314   :  { %v332_v37 = vpop.permute.xlu1 %331 }
 0x315   :  { %v334_v38 = vmul.f32 %v1438_v30, %v332_v37 }
 0x317   :  { %336 = vrot.lane.b32.xlu1 %v334_v38, %s1564_s5 }
 0x389   :  { %v337_v39 = vpop.permute.xlu1 %336 }
 0x38a   :  { %339 = vst.msk [vmem:[#allocation3] sm:$0xff] %vm236_vm4, %v337_v39  ;;  %1344 = vmatmul.mubr.msk.f32.vlgmr.msra.gmra.mxu1 %vm236_vm4, %v337_v39 }
 0x38b   :  { %1358 = vmatpush3.msra.mxu1 %v1644_v5  ;;  %1365 = vmatprep.mubr.msk.f32.mxu1 %vm1562_vm2, %v1561_v6 }
 0x38c   :  { %1359 = vmatprep.subr.mxu1 %v1561_v6 }
 0x38d   :  { %1360 = vmatpush3.msra.mxu1 %v1656_v7 }
 0x38e   :  { %1361 = vmatprep.subr.mxu1 %v1561_v6 }
 0x38f   :  { %1362 = vmatpush3.msra.mxu1 %v1666_v8 }
 0x390   :  { %1363 = vmatprep.subr.mxu1 %v1561_v6 }
 0x391   :  { %1364 = vmatpush3.msra.mxu1 %v1673_v9 }
 0x392   :  { %1379 = vmatprep.subr.mxu1 %v1561_v6 }
 0x44a   :  { %v412_v43 = vpop.f32.mrf.mxu1 }
 0x44b   :  { %v416_v44 = vadd.f32 %v412_v43, %v343_v42  ;;  %v660_v42 = vld [vmem:[#allocation2 + $0x4] ss:$8 sm:$0xf0] }
 0x44c   :  { %v1345_v45 = vpop.f32.mrf.mxu1  ;;  %v661_v43 = vor.u32 %v660_v42, %v659_v41 }
 0x44d   :  { %1441 = vtanh.f32 %v416_v44  ;;  %v1243_v47 = vmul.f32 -1.442695, %v416_v44 }
 0x44f   :  { %1443 = vpow2.f32 %v1243_v47 }
 0x45a   :  { %v1442_v46 = vpop.eup %1441 }
 0x45b   :  { %426 = vrot.lane.b32.xlu0 %v1442_v46, %s1563_s30 }
 0x45c   :  { %v1444_v48 = vpop.eup %1443 }
 0x45d   :  { %v420_v49 = vadd.f32 1.0, %v1444_v48 }
 0x45f   :  { %1445 = vrcp.f32 %v420_v49 }
 0x46c   :  { %v1446_v50 = vpop.eup %1445 }
 0x46d   :  { %v424_v53 = vmul.f32 %v1446_v50, %v328_v35 }
 0x4cd   :  { %v427_v51 = vpop.permute.xlu0 %426 }
 0x4ce   :  { %v429_v52 = vmul.f32 %v1446_v50, %v427_v51 }
 0x4d0   :  { %431 = vrot.lane.b32.xlu1 %v429_v52, %s1563_s30 }
 0x542   :  { %v432_v54 = vpop.permute.xlu1 %431 }
 0x543   :  { %v434_v55 = vadd.f32 %v432_v54, %v424_v53 }
 0x545   :  { %1447 = vtanh.f32 %v434_v55 }
 0x552   :  { %v1448_v56 = vpop.eup %1447 }
 0x553   :  { %437 = vrot.lane.b32.xlu0 %v1448_v56, %s1563_s30 }
 0x5c5   :  { %v438_v57 = vpop.permute.xlu0 %437 }
 0x5c6   :  { %v440_v58 = vmul.f32 %v1446_v50, %v438_v57 }
 0x5c8   :  { %442 = vrot.lane.b32.xlu1 %v440_v58, %s1564_s5 }
 0x63a   :  { %v443_v59 = vpop.permute.xlu1 %442 }
 0x63b   :  { %445 = vst.msk [vmem:[#allocation3 + $0x8] sm:$0xff] %vm236_vm4, %v443_v59  ;;  %1355 = vmatmul.mubr.msk.f32.vlgmr.msra.gmra.mxu0 %vm236_vm4, %v443_v59 }
 0x63c   :  { %1369 = vmatpush3.msra.mxu0 %v1644_v5  ;;  %1376 = vmatprep.mubr.msk.f32.mxu0 %vm1562_vm2, %v1561_v6 }
 0x63d   :  { %1370 = vmatprep.subr.mxu0 %v1561_v6 }
 0x63e   :  { %1371 = vmatpush3.msra.mxu0 %v1656_v7 }
 0x63f   :  { %1372 = vmatprep.subr.mxu0 %v1561_v6 }
 0x640   :  { %1373 = vmatpush3.msra.mxu0 %v1666_v8 }
 0x641   :  { %1374 = vmatprep.subr.mxu0 %v1561_v6 }
 0x642   :  { %1375 = vmatpush3.msra.mxu0 %v1673_v9 }
 0x643   :  { %1390 = vmatprep.subr.mxu0 %v1561_v6 }
 0x6fb   :  { %v518_v63 = vpop.f32.mrf.mxu0 }
 0x6fc   :  { %v522_v0 = vadd.f32 %v518_v63, %v449_v62  ;;  %v766_v62 = vld [vmem:[#allocation2 + $0x5] ss:$8 sm:$0xf0] }
 0x6fd   :  { %v1356_v1 = vpop.f32.mrf.mxu0  ;;  %v767_v63 = vor.u32 %v766_v62, %v765_v61 }
 0x6fe   :  { %1449 = vtanh.f32 %v522_v0  ;;  %v1245_v3 = vmul.f32 -1.442695, %v522_v0 }
 0x700   :  { %1451 = vpow2.f32 %v1245_v3 }
 0x70b   :  { %v1450_v2 = vpop.eup %1449 }
 0x70c   :  { %532 = vrot.lane.b32.xlu0 %v1450_v2, %s1563_s30 }
 0x70d   :  { %v1452_v4 = vpop.eup %1451 }
 0x70e   :  { %v526_v10 = vadd.f32 1.0, %v1452_v4 }
 0x710   :  { %1453 = vrcp.f32 %v526_v10 }
 0x71d   :  { %v1454_v11 = vpop.eup %1453 }
 0x71e   :  { %v530_v14 = vmul.f32 %v1454_v11, %v434_v55 }
 0x77e   :  { %v533_v12 = vpop.permute.xlu0 %532 }
 0x77f   :  { %v535_v13 = vmul.f32 %v1454_v11, %v533_v12 }
 0x781   :  { %537 = vrot.lane.b32.xlu1 %v535_v13, %s1563_s30 }
 0x7f3   :  { %v538_v15 = vpop.permute.xlu1 %537 }
 0x7f4   :  { %v540_v16 = vadd.f32 %v538_v15, %v530_v14 }
 0x7f6   :  { %1455 = vtanh.f32 %v540_v16 }
 0x803   :  { %v1456_v17 = vpop.eup %1455 }
 0x804   :  { %543 = vrot.lane.b32.xlu0 %v1456_v17, %s1563_s30  ;;  %v871_v17 = vld [vmem:[#allocation2 + $0x6] ss:$8 sm:$0xf] }
 0x876   :  { %v544_v18 = vpop.permute.xlu0 %543 }
 0x877   :  { %v546_v19 = vmul.f32 %v1454_v11, %v544_v18  ;;  %v872_v18 = vld [vmem:[#allocation2 + $0x6] ss:$8 sm:$0xf0] }
 0x879   :  { %548 = vrot.lane.b32.xlu1 %v546_v19, %s1564_s5  ;;  %v873_v19 = vor.u32 %v872_v18, %v871_v17 }
 0x8eb   :  { %v549_v20 = vpop.permute.xlu1 %548 }
 0x8ec   :  { %551 = vst.msk [vmem:[#allocation3 + $0x10] sm:$0xff] %vm236_vm4, %v549_v20  ;;  %1366 = vmatmul.mubr.msk.f32.vlgmr.msra.gmra.mxu1 %vm236_vm4, %v549_v20 }
 0x8ed   :  { %1380 = vmatpush3.msra.mxu1 %v1644_v5  ;;  %1387 = vmatprep.mubr.msk.f32.mxu1 %vm1562_vm2, %v1561_v6 }
 0x8ee   :  { %1381 = vmatprep.subr.mxu1 %v1561_v6 }
 0x8ef   :  { %1382 = vmatpush3.msra.mxu1 %v1656_v7 }
 0x8f0   :  { %1383 = vmatprep.subr.mxu1 %v1561_v6 }
 0x8f1   :  { %1384 = vmatpush3.msra.mxu1 %v1666_v8 }
 0x8f2   :  { %1385 = vmatprep.subr.mxu1 %v1561_v6 }
 0x8f3   :  { %1386 = vmatpush3.msra.mxu1 %v1673_v9 }
 0x8f4   :  { %1401 = vmatprep.subr.mxu1 %v1561_v6 }
 0x9ac   :  { %v624_v24 = vpop.f32.mrf.mxu1 }
 0x9ad   :  { %v628_v25 = vadd.f32 %v624_v24, %v555_v23 }
 0x9ae   :  { %v1367_v26 = vpop.f32.mrf.mxu1 }
 0x9af   :  { %1457 = vtanh.f32 %v628_v25  ;;  %v1247_v28 = vmul.f32 -1.442695, %v628_v25 }
 0x9b1   :  { %1459 = vpow2.f32 %v1247_v28 }
 0x9bc   :  { %v1458_v27 = vpop.eup %1457 }
 0x9bd   :  { %638 = vrot.lane.b32.xlu0 %v1458_v27, %s1563_s30 }
 0x9be   :  { %v1460_v29 = vpop.eup %1459 }
 0x9bf   :  { %v632_v30 = vadd.f32 1.0, %v1460_v29 }
 0x9c1   :  { %1461 = vrcp.f32 %v632_v30 }
 0x9ce   :  { %v1462_v31 = vpop.eup %1461 }
 0x9cf   :  { %v636_v34 = vmul.f32 %v1462_v31, %v540_v16 }
 0xa2f   :  { %v639_v32 = vpop.permute.xlu0 %638 }
 0xa30   :  { %v641_v33 = vmul.f32 %v1462_v31, %v639_v32 }
 0xa32   :  { %643 = vrot.lane.b32.xlu1 %v641_v33, %s1563_s30 }
 0xaa4   :  { %v644_v35 = vpop.permute.xlu1 %643 }
 0xaa5   :  { %v646_v36 = vadd.f32 %v644_v35, %v636_v34 }
 0xaa7   :  { %1463 = vtanh.f32 %v646_v36 }
 0xab4   :  { %v1464_v37 = vpop.eup %1463 }
 0xab5   :  { %649 = vrot.lane.b32.xlu0 %v1464_v37, %s1563_s30  ;;  %v977_v37 = vld [vmem:[#allocation2 + $0x7] ss:$8 sm:$0xf] }
 0xb27   :  { %v650_v38 = vpop.permute.xlu0 %649 }
 0xb28   :  { %v652_v39 = vmul.f32 %v1462_v31, %v650_v38  ;;  %v978_v38 = vld [vmem:[#allocation2 + $0x7] ss:$8 sm:$0xf0] }
 0xb2a   :  { %654 = vrot.lane.b32.xlu1 %v652_v39, %s1564_s5  ;;  %v979_v39 = vor.u32 %v978_v38, %v977_v37 }
 0xb9c   :  { %v655_v40 = vpop.permute.xlu1 %654 }
 0xb9d   :  { %657 = vst.msk [vmem:[#allocation3 + $0x18] sm:$0xff] %vm236_vm4, %v655_v40  ;;  %1377 = vmatmul.mubr.msk.f32.vlgmr.msra.gmra.mxu0 %vm236_vm4, %v655_v40 }
 0xb9e   :  { %1391 = vmatpush3.msra.mxu0 %v1644_v5  ;;  %1398 = vmatprep.mubr.msk.f32.mxu0 %vm1562_vm2, %v1561_v6 }
 0xb9f   :  { %1392 = vmatprep.subr.mxu0 %v1561_v6 }
 0xba0   :  { %1393 = vmatpush3.msra.mxu0 %v1656_v7 }
 0xba1   :  { %1394 = vmatprep.subr.mxu0 %v1561_v6 }
 0xba2   :  { %1395 = vmatpush3.msra.mxu0 %v1666_v8 }
 0xba3   :  { %1396 = vmatprep.subr.mxu0 %v1561_v6 }
 0xba4   :  { %1397 = vmatpush3.msra.mxu0 %v1673_v9  ;;  %v1089_v62 = vld [vmem:[#allocation3] ss:$8 sm:$0xf] }
 0xc5d   :  { %v730_v44 = vpop.f32.mrf.mxu0 }
 0xc5e   :  { %v734_v45 = vadd.f32 %v730_v44, %v661_v43 }
 0xc5f   :  { %v1378_v46 = vpop.f32.mrf.mxu0 }
 0xc60   :  { %1465 = vtanh.f32 %v734_v45  ;;  %v1249_v48 = vmul.f32 -1.442695, %v734_v45 }
 0xc62   :  { %1467 = vpow2.f32 %v1249_v48 }
 0xc6d   :  { %v1466_v47 = vpop.eup %1465 }
 0xc6e   :  { %744 = vrot.lane.b32.xlu0 %v1466_v47, %s1563_s30 }
 0xc6f   :  { %v1468_v49 = vpop.eup %1467 }
 0xc70   :  { %v738_v50 = vadd.f32 1.0, %v1468_v49 }
 0xc72   :  { %1469 = vrcp.f32 %v738_v50 }
 0xc7f   :  { %v1470_v51 = vpop.eup %1469 }
 0xc80   :  { %v742_v54 = vmul.f32 %v1470_v51, %v646_v36 }
 0xce0   :  { %v745_v52 = vpop.permute.xlu0 %744 }
 0xce1   :  { %v747_v53 = vmul.f32 %v1470_v51, %v745_v52 }
 0xce3   :  { %749 = vrot.lane.b32.xlu1 %v747_v53, %s1563_s30 }
 0xd55   :  { %v750_v55 = vpop.permute.xlu1 %749 }
 0xd56   :  { %v752_v56 = vadd.f32 %v750_v55, %v742_v54  ;;  %v1099_v54 = vld [vmem:[%s1833_s6 + $0x18] sm:$0xff]  ;;  %v1098_v55 = vld [vmem:[%s1833_s6 + $0x10] sm:$0xff] }
 0xd57   :  { %1412 = vmatprep.subr.mxu0 %v1099_v54 }
 0xd58   :  { %1471 = vtanh.f32 %v752_v56 }
 0xd65   :  { %v1472_v57 = vpop.eup %1471 }
 0xd66   :  { %755 = vrot.lane.b32.xlu0 %v1472_v57, %s1563_s30  ;;  %v1096_v57 = vld [vmem:[%s1833_s6] sm:$0xff] }
 0xdd8   :  { %v756_v58 = vpop.permute.xlu0 %755 }
 0xdd9   :  { %v758_v59 = vmul.f32 %v1470_v51, %v756_v58 }
 0xddb   :  { %760 = vrot.lane.b32.xlu1 %v758_v59, %s1564_s5 }
 0xe4d   :  { %v761_v60 = vpop.permute.xlu1 %760 }
 0xe4e   :  { %763 = vst.msk [vmem:[#allocation3 + $0x20] sm:$0xff] %vm236_vm4, %v761_v60  ;;  %1388 = vmatmul.mubr.msk.f32.vlgmr.msra.gmra.mxu1 %vm236_vm4, %v761_v60 }
 0xe4f   :  { %1402 = vmatpush3.msra.mxu1 %v1644_v5  ;;  %1409 = vmatprep.mubr.msk.f32.mxu1 %vm1562_vm2, %v1561_v6 }
 0xe50   :  { %1403 = vmatprep.subr.mxu1 %v1561_v6 }
 0xe51   :  { %1404 = vmatpush3.msra.mxu1 %v1656_v7 }
 0xe52   :  { %1405 = vmatprep.subr.mxu1 %v1561_v6 }
 0xe53   :  { %1406 = vmatpush3.msra.mxu1 %v1666_v8 }
 0xe54   :  { %1407 = vmatprep.subr.mxu1 %v1561_v6 }
 0xe55   :  { %1408 = vmatpush3.msra.mxu1 %v1673_v9 }
 0xf0e   :  { %v836_v0 = vpop.f32.mrf.mxu1 }
 0xf0f   :  { %v840_v5 = vadd.f32 %v836_v0, %v767_v63  ;;  %v1093_v63 = vld [vmem:[#allocation3 + $0x1] ss:$8 sm:$0xf] }
 0xf10   :  { %v1389_v1 = vpop.f32.mrf.mxu1 }
 0xf11   :  { %1473 = vtanh.f32 %v840_v5  ;;  %v1251_v3 = vmul.f32 -1.442695, %v840_v5 }
 0xf13   :  { %1475 = vpow2.f32 %v1251_v3 }
 0xf1e   :  { %v1474_v2 = vpop.eup %1473 }
 0xf1f   :  { %850 = vrot.lane.b32.xlu0 %v1474_v2, %s1563_s30 }
 0xf20   :  { %v1476_v7 = vpop.eup %1475 }
 0xf21   :  { %v844_v4 = vadd.f32 1.0, %v1476_v7 }
 0xf23   :  { %1477 = vrcp.f32 %v844_v4 }
 0xf30   :  { %v1478_v8 = vpop.eup %1477 }
 0xf31   :  { %v848_v9 = vmul.f32 %v1478_v8, %v752_v56  ;;  %v1097_v56 = vld [vmem:[%s1833_s6 + $0x8] sm:$0xff]  ;;  %s1566_s6 = smov [#allocation6]  }
 0xf32   :  { %s1209_s20 = sshll.u32 %s1566_s6, 4  ;;  %s1210_s20 = int_to_ptr.vmem [resolvable:$true] %s1209_s20 }
 0xf33   :  { %s1497_s1 = scalar_lea.vmem %s1210_s20, 32  ;;  %p1502_p1 = scmp.lt.s32.totalorder %s1210_s20, %s1210_s20 }
 0xf34   :  { %p1498_p0 = scmp.ne.s32.totalorder %s1210_s20, %s1497_s1  ;;  %p1503_p2 = scmp.lt.s32.totalorder %s1497_s1, %s1497_s1 }
 0xf36   :  { %p1504_p3 = por %p1503_p2, %p1502_p1 }
 0xf38   :  { %p1505_p4 = pnand %p1504_p3, %p1498_p0 }
 0xf91   :  { %v851_v10 = vpop.permute.xlu0 %850 }
 0xf92   :  { %v853_v6 = vmul.f32 %v1478_v8, %v851_v10 }
 0xf94   :  { %855 = vrot.lane.b32.xlu1 %v853_v6, %s1563_s30 }
0x1006   :  { %v856_v11 = vpop.permute.xlu1 %855 }
0x1007   :  { %v858_v12 = vadd.f32 %v856_v11, %v848_v9 }
0x1009   :  { %1479 = vtanh.f32 %v858_v12 }
0x1016   :  { %v1480_v13 = vpop.eup %1479 }
0x1017   :  { %861 = vrot.lane.b32.xlu0 %v1480_v13, %s1563_s30 }
0x1089   :  { %v862_v14 = vpop.permute.xlu0 %861 }
0x108a   :  { %v864_v15 = vmul.f32 %v1478_v8, %v862_v14 }
0x108c   :  { %866 = vrot.lane.b32.xlu1 %v864_v15, %s1564_s5 }
0x10fe   :  { %v867_v16 = vpop.permute.xlu1 %866 }
0x10ff   :  { %869 = vst.msk [vmem:[#allocation3 + $0x28] sm:$0xff] %vm236_vm4, %v867_v16  ;;  %1399 = vmatmul.mubr.msk.f32.vlgmr.msra.gmra.mxu0 %vm236_vm4, %v867_v16 }
0x1100   :  { %1413 = vmatpush3.msra.mxu0 %v1099_v54 }
0x1101   :  { %1414 = vmatprep.subr.mxu0 %v1098_v55 }
0x1102   :  { %1415 = vmatpush3.msra.mxu0 %v1098_v55 }
0x1103   :  { %1416 = vmatprep.subr.mxu0 %v1097_v56 }
0x1104   :  { %1417 = vmatpush3.msra.mxu0 %v1097_v56 }
0x1105   :  { %1418 = vmatprep.subr.mxu0 %v1096_v57 }
0x1106   :  { %1419 = vmatpush3.msra.mxu0 %v1096_v57 }
0x11bf   :  { %v942_v20 = vpop.f32.mrf.mxu0 }
0x11c0   :  { %v946_v21 = vadd.f32 %v942_v20, %v873_v19 }
0x11c1   :  { %v1400_v22 = vpop.f32.mrf.mxu0 }
0x11c2   :  { %1481 = vtanh.f32 %v946_v21  ;;  %v1253_v24 = vmul.f32 -1.442695, %v946_v21 }
0x11c4   :  { %1483 = vpow2.f32 %v1253_v24 }
0x11cf   :  { %v1482_v23 = vpop.eup %1481 }
0x11d0   :  { %956 = vrot.lane.b32.xlu0 %v1482_v23, %s1563_s30 }
0x11d1   :  { %v1484_v25 = vpop.eup %1483 }
0x11d2   :  { %v950_v26 = vadd.f32 1.0, %v1484_v25 }
0x11d4   :  { %1485 = vrcp.f32 %v950_v26 }
0x11e1   :  { %v1486_v27 = vpop.eup %1485 }
0x11e2   :  { %v954_v30 = vmul.f32 %v1486_v27, %v858_v12 }
0x1242   :  { %v957_v28 = vpop.permute.xlu0 %956 }
0x1243   :  { %v959_v29 = vmul.f32 %v1486_v27, %v957_v28 }
0x1245   :  { %961 = vrot.lane.b32.xlu1 %v959_v29, %s1563_s30 }
0x12b7   :  { %v962_v31 = vpop.permute.xlu1 %961 }
0x12b8   :  { %v964_v32 = vadd.f32 %v962_v31, %v954_v30 }
0x12ba   :  { %1487 = vtanh.f32 %v964_v32 }
0x12c7   :  { %v1488_v33 = vpop.eup %1487 }
0x12c8   :  { %967 = vrot.lane.b32.xlu0 %v1488_v33, %s1563_s30 }
0x133a   :  { %v968_v34 = vpop.permute.xlu0 %967 }
0x133b   :  { %v970_v35 = vmul.f32 %v1486_v27, %v968_v34 }
0x133d   :  { %972 = vrot.lane.b32.xlu1 %v970_v35, %s1564_s5 }
0x13af   :  { %v973_v36 = vpop.permute.xlu1 %972 }
0x13b0   :  { %975 = vst.msk [vmem:[#allocation3 + $0x30] sm:$0xff] %vm236_vm4, %v973_v36  ;;  %1410 = vmatmul.mubr.msk.f32.vlgmr.msra.gmra.mxu1 %vm236_vm4, %v973_v36 }
0x1470   :  { %v1048_v40 = vpop.f32.mrf.mxu1 }
0x1471   :  { %v1052_v41 = vadd.f32 %v1048_v40, %v979_v39 }
0x1472   :  { %v1411_v42 = vpop.f32.mrf.mxu1 }
0x1473   :  { %1489 = vtanh.f32 %v1052_v41  ;;  %v1255_v44 = vmul.f32 -1.442695, %v1052_v41 }
0x1475   :  { %1491 = vpow2.f32 %v1255_v44 }
0x1480   :  { %v1490_v43 = vpop.eup %1489 }
0x1481   :  { %1062 = vrot.lane.b32.xlu0 %v1490_v43, %s1563_s30 }
0x1482   :  { %v1492_v45 = vpop.eup %1491 }
0x1483   :  { %v1056_v46 = vadd.f32 1.0, %v1492_v45 }
0x1485   :  { %1493 = vrcp.f32 %v1056_v46 }
0x1492   :  { %v1494_v47 = vpop.eup %1493 }
0x1493   :  { %v1060_v50 = vmul.f32 %v1494_v47, %v964_v32 }
0x14f3   :  { %v1063_v48 = vpop.permute.xlu0 %1062 }
0x14f4   :  { %v1065_v49 = vmul.f32 %v1494_v47, %v1063_v48 }
0x14f6   :  { %1067 = vrot.lane.b32.xlu1 %v1065_v49, %s1563_s30 }
0x1568   :  { %v1068_v51 = vpop.permute.xlu1 %1067 }
0x1569   :  { %v1070_v52 = vadd.f32 %v1068_v51, %v1060_v50 }
0x156b   :  { %1495 = vtanh.f32 %v1070_v52 }
0x1578   :  { %v1496_v53 = vpop.eup %1495 }
0x1579   :  { %1073 = vrot.lane.b32.xlu0 %v1496_v53, %s1563_s30 }
0x157d   :  { %1085 = vrot.lane.b32.xlu0 %v1070_v52, %s1565_s11 }
0x15eb   :  { %v1074_v58 = vpop.permute.xlu0 %1073 }
0x15ec   :  { %v1076_v59 = vmul.f32 %v1494_v47, %v1074_v58 }
0x15ee   :  { %1078 = vrot.lane.b32.xlu1 %v1076_v59, %s1564_s5 }
0x15ef   :  { %v1086_v60 = vpop.permute.xlu0 %1085 }
0x15f0   :  { %1088 = vst.msk [vmem:[#allocation8] sm:$0x3] %vm1082_vm5, %v1086_v60 }
0x1660   :  { %v1079_v61 = vpop.permute.xlu1 %1078 }
0x1661   :  { %1081 = vst.msk [vmem:[#allocation3 + $0x38] sm:$0xff] %vm236_vm4, %v1079_v61 }
0x1662   :  { %1083 = vst.msk [vmem:[#allocation6] sm:$0x3] %vm1082_vm5, %v1079_v61 }
0x1668   :  { %v1090_v0 = vld [vmem:[#allocation3] ss:$8 sm:$0xf0]  ;;  %v1094_v5 = vld [vmem:[#allocation3 + $0x1] ss:$8 sm:$0xf0] }
0x1669   :  { %v1091_v1 = vor.u32 %v1090_v0, %v1089_v62  ;;  %v1095_v2 = vor.u32 %v1094_v5, %v1093_v63 }
0x166b   :  { %1420 = vmatprep.mubr.msk.f32.mxu0 %vm236_vm4, %v1091_v1 }
0x166c   :  { %1421 = vmatmul.mubr.msk.f32.vlgmr.msra.gmra.mxu0 %vm236_vm4, %v1095_v2 }
0x166d   :  { %1508 = shalt.err (!%p1505_p4)
}
0x166e   :  { %1212 = dma.vmem_to_hbm [thread:$0]  %s1210_s20, 32, %s1836_s9, [#allocation7]  }
0x166f   :  { %s1567_s23 = smov [#allocation8]  }
0x1670   :  { %s1219_s0 = sshll.u32 %s1567_s23, 4  ;;  %s1220_s0 = int_to_ptr.vmem [resolvable:$true] %s1219_s0 }
0x1671   :  { %s1517_s3 = scalar_lea.vmem %s1220_s0, 32  ;;  %p1522_p6 = scmp.lt.s32.totalorder %s1220_s0, %s1220_s0 }
0x1672   :  { %p1518_p5 = scmp.ne.s32.totalorder %s1220_s0, %s1517_s3  ;;  %p1523_p7 = scmp.lt.s32.totalorder %s1517_s3, %s1517_s3 }
0x1674   :  { %p1524_p8 = por %p1523_p7, %p1522_p6 }
0x1676   :  { %p1525_p9 = pnand %p1524_p8, %p1518_p5 }
0x1678   :  { %1528 = shalt.err (!%p1525_p9)
}
0x1679   :  { %1222 = dma.vmem_to_hbm [thread:$0]  %s1220_s0, 32, %s1837_s10, [#allocation7]   ;;  %v1256_v3 = vld [vmem:[%s1834_s7] ss:$0 sm:$0xff]  ;;  %vm1188_vm6 = vcmask 64512  }
0x167a   :  { %s1568_s4 = smov [#allocation4]  }
0x167b   :  { %s1196_s9 = sshll.u32 %s1568_s4, 4  ;;  %s1197_s9 = int_to_ptr.vmem [resolvable:$true] %s1196_s9 }
0x167c   :  { %s1537_s28 = scalar_lea.vmem %s1197_s9, 256  ;;  %p1542_p11 = scmp.lt.s32.totalorder %s1197_s9, %s1197_s9 }
0x167d   :  { %p1538_p10 = scmp.ne.s32.totalorder %s1197_s9, %s1537_s28  ;;  %p1543_p12 = scmp.lt.s32.totalorder %s1537_s28, %s1537_s28 }
0x167f   :  { %p1544_p13 = por %p1543_p12, %p1542_p11 }
0x1681   :  { %p1545_p0 = pnand %p1544_p13, %p1538_p10 }
0x172c   :  { %v1422_v7 = vpop.f32.mrf.mxu0 }
0x172d   :  { %v1185_v4 = vadd.f32 %v1422_v7, %v1256_v3 }
0x172e   :  { %v1179_v8 = vpop.f32.mrf.mxu0 }
0x172f   :  { %1190 = vst.msk [vmem:[#allocation4 + $0x8] sm:$0xff] %vm1188_vm6, %v1185_v4  ;;  %v1180_v10 = vadd.f32 %v1256_v3, %v1179_v8 }
0x1731   :  { %1189 = vst.msk [vmem:[#allocation4] sm:$0xff] %vm1188_vm6, %v1180_v10 }
0x1732   :  { %1548 = shalt.err (!%p1545_p0)
}
0x1733   :  { %s1569_s10 = smov 128   ;;  %s1570_s2 = smov 8  }
0x1734   :  { %1202 = dma.vmem_to_hbm [thread:$0]  %s1197_s9, 256, %s1835_s8, [#allocation5], %s1569_s10, %s1569_s10, %s1570_s2  }
0x1735   :  { %1557 = dma.done.wait [#allocation5], 256  }
0x1736   :  { %1558 = vsyncadd [#allocation5], 4294967040 }
0x1737   :  { %1559 = dma.done.wait [#allocation7], 64  }
0x1738   :  { %1560 = vsyncadd [#allocation7], 4294967232 }
0x1739   :  { %1232 = vsyncpa [#allocation5], 1 }
0x173a   :  { %1233 = vsyncpa [#allocation7], 1 }

</bundles_post_ra>
